<compile_context>
chip_gen: v7x
topology: tpu7x:2x2x1
jax: 0.10.0
libtpu: 0.0.40
codegen_flags: <defaults>
</compile_context>

<pallas_src>
import math
from functools import partial

import numpy as np
import jax
import jax.numpy as jnp
from jax.experimental import pallas as pl
from jax.experimental.pallas import tpu as pltpu


# ----------------------------- sym_utils bits -------------------------------
def num_perms(n, m):
    # number of ordered m-tuples of distinct elements from n: n! / (n-m)!
    return math.factorial(n) // math.factorial(n - m)


def sizes_to_size(n, sizes):
    return sum(sizes[m] * num_perms(n, m) for m in range(len(sizes)))


def gate_permutation(n, hid_sizes):
    """order[new_idx] = old_idx, converting the per-block (g,i,f,o) gate layout
    used by SymLSTMCell into a global [G | I | F | O] layout (each width H)."""
    order = []
    for k in range(4):  # 0:g 1:i 2:f 3:o
        st = 0
        for m, w in enumerate(hid_sizes):
            if w:
                for _ in range(num_perms(n, m)):
                    base = st * 4
                    order.extend(range(base + k * w, base + (k + 1) * w))
                    st += w
    return np.asarray(order, dtype=np.int32)


def _round_up(x, m):
    return (x + m - 1) // m * m


# ------------------------------- Pallas kernel ------------------------------
def _sym_lstm_kernel(xh_ref, c0_ref, w_ref, b_ref, h1_ref, c1_ref):
    # xh_ref: [TB, Kcat]      (matmul dtype; [x | h0] fused)
    # c0_ref: [TB, Hp]  f32   (Hp = round_up(H, 128), zero padded)
    # w_ref : [Kcat, 4*Hp]    ([W_ih_t ; W_hh_t], gate-permuted, lane-padded)
    # b_ref : [1, 4*Hp] f32   (b_ih + b_hh, gate-permuted, lane-padded)
    gates = jnp.dot(xh_ref[...], w_ref[...],
                    preferred_element_type=jnp.float32) + b_ref[...]
    Hp = c0_ref.shape[-1]
    g = gates[:, 0 * Hp:1 * Hp]          # lane-aligned slices (Hp % 128 == 0)
    i = gates[:, 1 * Hp:2 * Hp]
    f = gates[:, 2 * Hp:3 * Hp]
    o = gates[:, 3 * Hp:4 * Hp]

    c0 = c0_ref[...].astype(jnp.float32)
    c1 = jnp.tanh(g) * jax.nn.sigmoid(i) + c0 * jax.nn.sigmoid(f)
    h1 = jnp.tanh(c1) * jax.nn.sigmoid(o)

    c1_ref[...] = c1.astype(c1_ref.dtype)
    h1_ref[...] = h1.astype(h1_ref.dtype)


# ------------------------- parameter preparation (hoistable) ----------------
def prepare_sym_lstm_params(w_ih, b_ih, w_hh, b_hh, *, n, hid_sizes,
                            matmul_dtype=jnp.bfloat16):
    """One-time weight/bias prep: gate relabel + lane padding + fused stack.

    Hoist this out of any per-timestep loop; it does not depend on the
    recurrent state.
    Returns:
      w_t  : [in_size + hid_size, 4*Hp]  (matmul_dtype)
      b_pad: [1, 4*Hp]                   (float32)
    """
    H = sizes_to_size(n, hid_sizes)
    Hp = _round_up(H, 128)
    order = gate_permutation(n, tuple(hid_sizes))

    # Fuse the two linear maps and relabel the gate axis to [G|I|F|O].
    w_cat = jnp.concatenate([w_ih, w_hh], axis=1)[order, :]      # [4H, Kcat]
    Kcat = w_cat.shape[1]
    w_pad = jnp.zeros((4, Hp, Kcat), w_cat.dtype)
    w_pad = w_pad.at[:, :H, :].set(w_cat.reshape(4, H, Kcat))    # zero-pad lanes
    w_t = w_pad.reshape(4 * Hp, Kcat).T.astype(matmul_dtype)     # [Kcat, 4*Hp]

    b = (b_ih + b_hh)[order].astype(jnp.float32).reshape(4, H)
    b_pad = jnp.zeros((4, Hp), jnp.float32).at[:, :H].set(b).reshape(1, 4 * Hp)
    return w_t, b_pad


# ------------------------------- cell wrapper -------------------------------
@partial(jax.jit, static_argnames=("batch_tile",))
def sym_lstm_cell_prepared(x, h0, c0, w_t, b_pad, *, batch_tile=256):
    """Single LSTM-cell step with pre-prepared (fused, padded) parameters."""
    B = x.shape[0]
    H = h0.shape[-1]
    Hp = b_pad.shape[-1] // 4
    Kcat = w_t.shape[0]
    out_dtype = x.dtype
    matmul_dtype = w_t.dtype

    # Batch tile: multiple of 16 sublanes (covers f32 and bf16 packing).
    TB = _round_up(min(batch_tile, _round_up(B, 16)), 16)
    Bp = _round_up(B, TB)

    # Fused activation input [x | h0]; zero-pad batch + hidden lanes.
    xh = jnp.concatenate([x, h0], axis=-1).astype(matmul_dtype)
    xh = jnp.zeros((Bp, Kcat), matmul_dtype).at[:B, :].set(xh)
    c0p = jnp.zeros((Bp, Hp), jnp.float32).at[:B, :H].set(
        c0.astype(jnp.float32))

    grid = (Bp // TB,)
    h1, c1 = pl.pallas_call(
        _sym_lstm_kernel,
        out_shape=(jax.ShapeDtypeStruct((Bp, Hp), out_dtype),
                   jax.ShapeDtypeStruct((Bp, Hp), out_dtype)),
        grid_spec=pltpu.PrefetchScalarGridSpec(
            num_scalar_prefetch=0,
            grid=grid,
            in_specs=[
                pl.BlockSpec((TB, Kcat), lambda i: (i, 0)),       # [x|h0] tile
                pl.BlockSpec((TB, Hp), lambda i: (i, 0)),         # c0 tile
                pl.BlockSpec((Kcat, 4 * Hp), lambda i: (0, 0)),   # weights, resident
                pl.BlockSpec((1, 4 * Hp), lambda i: (0, 0)),      # bias, resident
            ],
            out_specs=[
                pl.BlockSpec((TB, Hp), lambda i: (i, 0)),         # h1 tile
                pl.BlockSpec((TB, Hp), lambda i: (i, 0)),         # c1 tile
            ],
        ),
        compiler_params=pltpu.CompilerParams(
            # batch axis is independent -> megacore sharding on v7x
            dimension_semantics=("parallel",)),
    )(xh, c0p, w_t, b_pad)

    return h1[:B, :H], c1[:B, :H]


def sym_lstm_cell(x, hx, w_ih, b_ih, w_hh, b_hh, *, n, hid_sizes,
                  matmul_dtype=jnp.bfloat16, batch_tile=256):
    """Convenience wrapper: prep + cell step (prep should be hoisted for scans)."""
    B = x.shape[0]
    H = sizes_to_size(n, hid_sizes)
    if hx is None:
        h0 = jnp.zeros((B, H), x.dtype)
        c0 = jnp.zeros((B, H), x.dtype)
    else:
        h0, c0 = hx
    w_t, b_pad = prepare_sym_lstm_params(
        w_ih, b_ih, w_hh, b_hh, n=n, hid_sizes=tuple(hid_sizes),
        matmul_dtype=matmul_dtype)
    return sym_lstm_cell_prepared(x, h0, c0, w_t, b_pad, batch_tile=batch_tile)


# ------------------------- pure-JAX reference (PyTorch semantics) -----------
def ref_forward(x, hx, w_ih, b_ih, w_hh, b_hh, n, hid_sizes):
    B = x.shape[0]
    H = sizes_to_size(n, hid_sizes)
    if hx is None:
        h0 = jnp.zeros((B, H), x.dtype)
        c0 = jnp.zeros((B, H), x.dtype)
    else:
        h0, c0 = hx
    gates = x @ w_ih.T + b_ih + h0 @ w_hh.T + b_hh
    h1 = jnp.zeros_like(h0)
    c1 = jnp.zeros_like(c0)
    st = 0
    for m, w in enumerate(hid_sizes):
        if w:
            for _ in range(num_perms(n, m)):
                blk = gates[:, st * 4: st * 4 + 4 * w]
                g, i, f, o = jnp.split(blk, 4, axis=-1)
                c1b = jnp.tanh(g) * jax.nn.sigmoid(i) \
                    + c0[:, st:st + w] * jax.nn.sigmoid(f)
                h1b = jnp.tanh(c1b) * jax.nn.sigmoid(o)
                c1 = c1.at[:, st:st + w].set(c1b)
                h1 = h1.at[:, st:st + w].set(h1b)
                st += w
    return h1, c1


# ------------------------------------ main -----------------------------------
if __name__ == "__main__":
    n = 2
    in_sizes = (6, 3, 2)    # -> in_size  = 6*1 + 3*2 + 2*2 = 16
    hid_sizes = (8, 4, 2)   # -> hid_size = 8*1 + 4*2 + 2*2 = 20
    in_size = sizes_to_size(n, in_sizes)
    hid_size = sizes_to_size(n, hid_sizes)
    gate_size = 4 * hid_size
    B = 8

    key = jax.random.PRNGKey(0)
    k_x, k_h, k_c, k_wi, k_wh, k_bi, k_bh = jax.random.split(key, 7)

    stdv = 1.0 / math.sqrt(hid_size)
    w_ih = jax.random.uniform(k_wi, (gate_size, in_size), jnp.float32, -stdv, stdv)
    w_hh = jax.random.uniform(k_wh, (gate_size, hid_size), jnp.float32, -stdv, stdv)
    b_ih = jax.random.uniform(k_bi, (gate_size,), jnp.float32, -stdv, stdv)
    b_hh = jax.random.uniform(k_bh, (gate_size,), jnp.float32, -stdv, stdv)

    x = jax.random.normal(k_x, (B, in_size), jnp.float32)
    h0 = jax.random.normal(k_h, (B, hid_size), jnp.float32)
    c0 = jax.random.normal(k_c, (B, hid_size), jnp.float32)

    h1_ref, c1_ref = ref_forward(x, (h0, c0), w_ih, b_ih, w_hh, b_hh,
                                 n, hid_sizes)

    # 1) f32 matmul path: strict check against reference.
    h1, c1 = sym_lstm_cell(x, (h0, c0), w_ih, b_ih, w_hh, b_hh,
                           n=n, hid_sizes=hid_sizes,
                           matmul_dtype=jnp.float32)
    jax.block_until_ready((h1, c1))
    np.testing.assert_allclose(np.asarray(h1), np.asarray(h1_ref),
                               rtol=1e-5, atol=1e-5)
    np.testing.assert_allclose(np.asarray(c1), np.asarray(c1_ref),
                               rtol=1e-5, atol=1e-5)

    # 2) default bf16 matmul path (f32 accumulation + f32 cell update):
    #    looser tolerance vs the f32 reference.
    h1b, c1b = sym_lstm_cell(x, (h0, c0), w_ih, b_ih, w_hh, b_hh,
                             n=n, hid_sizes=hid_sizes)
    jax.block_until_ready((h1b, c1b))
    np.testing.assert_allclose(np.asarray(h1b), np.asarray(h1_ref),
                               rtol=3e-2, atol=3e-2)
    np.testing.assert_allclose(np.asarray(c1b), np.asarray(c1_ref),
                               rtol=3e-2, atol=3e-2)

    # 3) hx=None path (f32, strict).
    h1n, c1n = sym_lstm_cell(x, None, w_ih, b_ih, w_hh, b_hh,
                             n=n, hid_sizes=hid_sizes,
                             matmul_dtype=jnp.float32)
    jax.block_until_ready((h1n, c1n))
    h1n_ref, c1n_ref = ref_forward(x, None, w_ih, b_ih, w_hh, b_hh, n, hid_sizes)
    np.testing.assert_allclose(np.asarray(h1n), np.asarray(h1n_ref),
                               rtol=1e-5, atol=1e-5)
    np.testing.assert_allclose(np.asarray(c1n), np.asarray(c1n_ref),
                               rtol=1e-5, atol=1e-5)

    print("KERNEL_OK")
</pallas_src>

<mosaic_0001>
module attributes {stable_mosaic.version = 11 : i64} {
  func.func @_sym_lstm_kernel(%arg0: i32, %arg1: memref<16x36xf32, #tpu.memory_space<vmem>>, %arg2: memref<16x128xf32, #tpu.memory_space<vmem>>, %arg3: memref<36x512xf32, #tpu.memory_space<vmem>>, %arg4: memref<1x512xf32, #tpu.memory_space<vmem>>, %arg5: memref<16x128xf32, #tpu.memory_space<vmem>>, %arg6: memref<16x128xf32, #tpu.memory_space<vmem>>) attributes {dimension_semantics = [#tpu.dimension_semantics<parallel>], iteration_bounds = array<i64: 1>, scalar_prefetch = 0 : i64, scratch_operands = 0 : i64, tpu.core_type = #tpu.core_type<tc>, window_params = [{transform_indices = @transform_0, window_bounds = array<i64: 16, 36>}, {transform_indices = @transform_1, window_bounds = array<i64: 16, 128>}, {pipeline_mode = #tpu.pipeline_mode<synchronous>, transform_indices = @transform_2, window_bounds = array<i64: 36, 512>}, {pipeline_mode = #tpu.pipeline_mode<synchronous>, transform_indices = @transform_3, window_bounds = array<i64: 1, 512>}, {transform_indices = @transform_4, window_bounds = array<i64: 16, 128>}, {transform_indices = @transform_5, window_bounds = array<i64: 16, 128>}]} {
    %c0 = arith.constant 0 : index
    %c0_0 = arith.constant 0 : index
    %0 = vector.load %arg1[%c0, %c0_0] : memref<16x36xf32, #tpu.memory_space<vmem>>, vector<16x36xf32>
    %c0_1 = arith.constant 0 : index
    %c0_2 = arith.constant 0 : index
    %1 = vector.load %arg3[%c0_1, %c0_2] : memref<36x512xf32, #tpu.memory_space<vmem>>, vector<36x512xf32>
    %cst = arith.constant dense<0.000000e+00> : vector<16x512xf32>
    %2 = tpu.matmul %0, %1, %cst {dimension_numbers = #tpu.dot_dimension_numbers<[1], [0], [0], [1], [0, 0, 1, 1], [], []>} : vector<16x36xf32>, vector<36x512xf32>, vector<16x512xf32> -> vector<16x512xf32>
    %c0_3 = arith.constant 0 : index
    %c0_4 = arith.constant 0 : index
    %3 = vector.load %arg4[%c0_3, %c0_4] : memref<1x512xf32, #tpu.memory_space<vmem>>, vector<1x512xf32>
    %4 = vector.broadcast %3 : vector<1x512xf32> to vector<16x512xf32>
    %5 = arith.addf %2, %4 : vector<16x512xf32>
    %6 = vector.extract_strided_slice %5 {offsets = [0, 0], sizes = [16, 128], strides = [1, 1]} : vector<16x512xf32> to vector<16x128xf32>
    %7 = vector.extract_strided_slice %5 {offsets = [0, 128], sizes = [16, 128], strides = [1, 1]} : vector<16x512xf32> to vector<16x128xf32>
    %8 = vector.extract_strided_slice %5 {offsets = [0, 256], sizes = [16, 128], strides = [1, 1]} : vector<16x512xf32> to vector<16x128xf32>
    %9 = vector.extract_strided_slice %5 {offsets = [0, 384], sizes = [16, 128], strides = [1, 1]} : vector<16x512xf32> to vector<16x128xf32>
    %c0_5 = arith.constant 0 : index
    %c0_6 = arith.constant 0 : index
    %10 = vector.load %arg2[%c0_5, %c0_6] : memref<16x128xf32, #tpu.memory_space<vmem>>, vector<16x128xf32>
    %11 = math.tanh %6 : vector<16x128xf32>
    %12 = arith.negf %7 : vector<16x128xf32>
    %13 = math.exp %12 : vector<16x128xf32>
    %cst_7 = arith.constant 1.000000e+00 : f32
    %14 = vector.broadcast %cst_7 : f32 to vector<16x128xf32>
    %15 = arith.addf %14, %13 : vector<16x128xf32>
    %16 = arith.divf %14, %15 : vector<16x128xf32>
    %17 = arith.mulf %11, %16 : vector<16x128xf32>
    %18 = arith.negf %8 : vector<16x128xf32>
    %19 = math.exp %18 : vector<16x128xf32>
    %cst_8 = arith.constant 1.000000e+00 : f32
    %20 = vector.broadcast %cst_8 : f32 to vector<16x128xf32>
    %21 = arith.addf %20, %19 : vector<16x128xf32>
    %22 = arith.divf %20, %21 : vector<16x128xf32>
    %23 = arith.mulf %10, %22 : vector<16x128xf32>
    %24 = arith.addf %17, %23 : vector<16x128xf32>
    %25 = math.tanh %24 : vector<16x128xf32>
    %26 = arith.negf %9 : vector<16x128xf32>
    %27 = math.exp %26 : vector<16x128xf32>
    %cst_9 = arith.constant 1.000000e+00 : f32
    %28 = vector.broadcast %cst_9 : f32 to vector<16x128xf32>
    %29 = arith.addf %28, %27 : vector<16x128xf32>
    %30 = arith.divf %28, %29 : vector<16x128xf32>
    %31 = arith.mulf %25, %30 : vector<16x128xf32>
    %c0_10 = arith.constant 0 : index
    %c0_11 = arith.constant 0 : index
    %32 = vector.load %arg6[%c0_10, %c0_11] : memref<16x128xf32, #tpu.memory_space<vmem>>, vector<16x128xf32>
    tpu.vector_store %arg6[%c0_10, %c0_11], %24 {strides = array<i32>} : memref<16x128xf32, #tpu.memory_space<vmem>>, vector<16x128xf32>,
    %c0_12 = arith.constant 0 : index
    %c0_13 = arith.constant 0 : index
    %33 = vector.load %arg5[%c0_12, %c0_13] : memref<16x128xf32, #tpu.memory_space<vmem>>, vector<16x128xf32>
    tpu.vector_store %arg5[%c0_12, %c0_13], %31 {strides = array<i32>} : memref<16x128xf32, #tpu.memory_space<vmem>>, vector<16x128xf32>,
    return
  }
  func.func @transform_0(%arg0: i32) -> (i32, i32) {
    %c0_i32 = arith.constant 0 : i32
    %c0_i32_0 = arith.constant 0 : i32
    return %arg0, %c0_i32 : i32, i32
  }
  func.func @transform_1(%arg0: i32) -> (i32, i32) {
    %c0_i32 = arith.constant 0 : i32
    %c0_i32_0 = arith.constant 0 : i32
    return %arg0, %c0_i32 : i32, i32
  }
  func.func @transform_2(%arg0: i32) -> (i32, i32) {
    %c0_i32 = arith.constant 0 : i32
    %c0_i32_0 = arith.constant 0 : i32
    %c0_i32_1 = arith.constant 0 : i32
    return %c0_i32, %c0_i32_0 : i32, i32
  }
  func.func @transform_3(%arg0: i32) -> (i32, i32) {
    %c0_i32 = arith.constant 0 : i32
    %c0_i32_0 = arith.constant 0 : i32
    %c0_i32_1 = arith.constant 0 : i32
    return %c0_i32, %c0_i32_0 : i32, i32
  }
  func.func @transform_4(%arg0: i32) -> (i32, i32) {
    %c0_i32 = arith.constant 0 : i32
    %c0_i32_0 = arith.constant 0 : i32
    return %arg0, %c0_i32 : i32, i32
  }
  func.func @transform_5(%arg0: i32) -> (i32, i32) {
    %c0_i32 = arith.constant 0 : i32
    %c0_i32_0 = arith.constant 0 : i32
    return %arg0, %c0_i32 : i32, i32
  }
}

</mosaic_0001>

<bundles_post_ra>
// kernel: sym_lstm_cell_prepared.1
= control target key start
LH: loop header
LB: loop body
LE: loop exit
PB: predicated region body
PF: predicated region fallthrough
CT: control target
= control target key end

     0   :  { %11 = vsyncpa [#allocation3], 0  ;;  %s404_s18 = smov [#allocation2]   ;;  %s477_s0 = inlined_call_operand.vmem [shape: f32[16,36], index: 0, kind: input, shape index: {}]   ;;  %s478_s1 = inlined_call_operand.vmem [shape: f32[16,128], index: 1, kind: input, shape index: {}]   ;;  %s479_s2 = inlined_call_operand.hbm [shape: f32[36,512], index: 2, kind: input, shape index: {}]   ;;  %s480_s3 = inlined_call_operand.vmem [shape: f32[1,512], index: 3, kind: input, shape index: {}]   ;;  %s481_s4 = inlined_call_operand.vmem [shape: f32[16,128], index: 4, kind: output, shape index: {0}]   ;;  %s482_s5 = inlined_call_operand.vmem [shape: f32[16,128], index: 5, kind: output, shape index: {1}]  }
   0x1   :  { %s21_s19 = sshll.u32 %s404_s18, 4  ;;  %s380_s22 = scalar_lea.hbm %s479_s2, 2560  ;;  %s22_s19 = int_to_ptr.vmem [resolvable:$true] %s21_s19 }
   0x2   :  { %p381_p0 = scmp.ne.s32.totalorder %s479_s2, %s380_s22  ;;  %p384_p1 = scmp.lt.u32.totalorder %s380_s22, %s479_s2 }
   0x4   :  { %p386_p2 = pnand %p384_p1, %p381_p0 }
   0x6   :  { %389 = shalt.err (!%p386_p2)
}
   0x7   :  { %s390_s27 = scalar_lea.vmem %s22_s19, 2560  ;;  %p395_p4 = scmp.lt.s32.totalorder %s22_s19, %s22_s19 }
   0x8   :  { %p391_p3 = scmp.ne.s32.totalorder %s22_s19, %s390_s27  ;;  %p396_p5 = scmp.lt.s32.totalorder %s390_s27, %s390_s27 }
   0xa   :  { %p397_p6 = por %p396_p5, %p395_p4 }
   0xc   :  { %p398_p7 = pnand %p397_p6, %p391_p3 }
   0xe   :  { %401 = shalt.err (!%p398_p7)
}
   0xf   :  { %s405_s28 = smov 512   ;;  %s406_s29 = smov 32  }
  0x10   :  { %27 = dma.hbm_to_vmem [thread:$0]  %s479_s2, 2560, %s22_s19, [#allocation3], %s405_s28, %s405_s28, %s406_s29  }
  0x11   :  { %402 = dma.done.wait [#allocation3], 2560  }
  0x12   :  { %403 = vsyncadd [#allocation3], 4294964736  ;;  %v407_v0 = vmov 0.0   ;;  %v36_v1 = vld [vmem:[#allocation2 + $0x8] sm:$0xff]  ;;  %v38_v3 = vld [vmem:[#allocation2 + $0x18] sm:$0xff]  ;;  %vm84_vm0 = vcmask 1043456   ;;  %v57_v31 = vlaneseq }
  0x13   :  { %161 = vmatprep.mubr.f32.mxu0 %v407_v0  ;;  %238 = vmatprep.mubr.f32.mxu1 %v407_v0  ;;  %v40_v2 = vld [vmem:[#allocation2 + $0x28] sm:$0xff]  ;;  %v42_v5 = vld [vmem:[#allocation2 + $0x38] sm:$0xff]  ;;  %v35_v6 = vld [vmem:[#allocation2] sm:$0xff]  ;;  %vm77_vm1 = vcmask 293888  }
  0x14   :  { %v328_v4 = vpack.c.bf16 %v40_v2, %v36_v1  ;;  %v39_v7 = vld [vmem:[#allocation2 + $0x20] sm:$0xff]  ;;  %v336_v8 = vpack.c.bf16 %v42_v5, %v38_v3  ;;  %v37_v10 = vld [vmem:[#allocation2 + $0x10] sm:$0xff]  ;;  %v44_v12 = vld [vmem:[#allocation2 + $0x48] sm:$0xff]  ;;  %v58_v32 = vshrl.u32 %v57_v31, 7 }
  0x15   :  { %v330_v9 = vpack.c.bf16 %v39_v7, %v35_v6  ;;  %v41_v11 = vld [vmem:[#allocation2 + $0x30] sm:$0xff]  ;;  %v48_v14 = vld [vmem:[#allocation2 + $0x68] sm:$0xff]  ;;  %v46_v15 = vld [vmem:[#allocation2 + $0x58] sm:$0xff] }
  0x16   :  { %329 = vmatprep.subr.bf16.mxu0 %v328_v4  ;;  %v338_v13 = vpack.c.bf16 %v41_v11, %v37_v10  ;;  %v50_v16 = vld [vmem:[#allocation2 + $0x78] sm:$0xff]  ;;  %337 = vmatprep.subr.bf16.mxu1 %v336_v8  ;;  %v332_v17 = vpack.c.bf16 %v48_v14, %v44_v12  ;;  %v43_v19 = vld [vmem:[#allocation2 + $0x40] sm:$0xff]  ;;  %v45_v21 = vld [vmem:[#allocation2 + $0x50] sm:$0xff]  ;;  %v67_v33 = vsub.s32 2, %v58_v32  ;;  %v63_v34 = vsub.s32 1, %v58_v32 }
  0x17   :  { %331 = vmatpush1.bf16.msra.mxu0 %v330_v9  ;;  %v340_v18 = vpack.c.bf16 %v50_v16, %v46_v15  ;;  %v47_v20 = vld [vmem:[#allocation2 + $0x60] sm:$0xff]  ;;  %v49_v23 = vld [vmem:[#allocation2 + $0x70] sm:$0xff]  ;;  %v52_v25 = vld [vmem:[#allocation2 + $0x88] sm:$0xf]  ;;  %v71_v41 = vsub.s32 3, %v58_v32  ;;  %v59_v51 = vsub.s32 0, %v58_v32 }
  0x18   :  { %339 = vmatpush1.bf16.msra.mxu1 %v338_v13  ;;  %v334_v22 = vpack.c.bf16 %v47_v20, %v43_v19  ;;  %333 = vmatprep.subr.bf16.mxu0 %v332_v17  ;;  %v342_v24 = vpack.c.bf16 %v49_v23, %v45_v21  ;;  %v54_v26 = vld [vmem:[#allocation2 + $0x98] sm:$0xf]  ;;  %v51_v27 = vld [vmem:[#allocation2 + $0x80] sm:$0xf]  ;;  %v53_v28 = vld [vmem:[#allocation2 + $0x90] sm:$0xf] }
  0x19   :  { %341 = vmatprep.subr.bf16.mxu1 %v340_v18  ;;  %v33_v29 = vld [vmem:[%s477_s0] sm:$0xff]  ;;  %v34_v30 = vld [vmem:[%s477_s0 + $0x8] sm:$0xff] }
  0x1a   :  { %v55_v35 = vld [vmem:[%s480_s3] sm:$0xf]  ;;  %v252_v17 = vld [vmem:[%s478_s1 + $0x8] sm:$0xff] }
  0x1b   :  { %335 = vmatpush1.bf16.msra.mxu0 %v334_v22  ;;  %v68_v36 = vrot.slane %v55_v35, %v67_v33  ;;  %v64_v37 = vrot.slane %v55_v35, %v63_v34  ;;  %v72_v48 = vrot.slane %v55_v35, %v71_v41  ;;  %v60_v58 = vrot.slane %v55_v35, %v59_v51  ;;  %v251_v9 = vld [vmem:[%s478_s1] sm:$0xff] }
  0x1c   :  { %343 = vmatpush1.bf16.msra.mxu1 %v342_v24  ;;  %314 = vmatprep.subr.msk.mxu0 %vm84_vm0, %v52_v25 }
  0x1d   :  { %318 = vmatprep.subr.msk.mxu1 %vm84_vm0, %v54_v26 }
  0x1f   :  { %315 = vmatpush1.msk.msra.mxu0 %vm84_vm0, %v51_v27 }
  0x20   :  { %319 = vmatpush1.msk.msra.mxu1 %vm84_vm0, %v53_v28  ;;  %316 = vmatmul.mubr.msk.f32.vlgmr.msra.gmra.mrb[0].mxu0 %vm77_vm1, %v33_v29 }
  0x21   :  { %320 = vmatmul.mubr.msk.f32.vlgmr.msra.gmra.mrb[0].mxu1 %vm77_vm1, %v33_v29  ;;  %167 = vmatprep.mubr.f32.mxu0 %v407_v0 }
  0x22   :  { %244 = vmatprep.mubr.f32.mxu1 %v407_v0 }
  0x24   :  { %317 = vmatmul.mubr.msk.f32.gmra.mrb[2].mxu0 %vm77_vm1, %v34_v30 }
  0x25   :  { %321 = vmatmul.mubr.msk.f32.gmra.mrb[2].mxu1 %vm77_vm1, %v34_v30 }
  0xf3   :  { %v163_v38 = vpop.f32.mrb[0].mxu0 }
  0xf4   :  { %v240_v39 = vpop.f32.mrb[0].mxu1  ;;  %v165_v40 = vpop.f32.mrb[1].mxu0  ;;  %v164_v61 = vadd.f32 %v163_v38, %v60_v58 }
  0xf5   :  { %v241_v42 = vadd.f32 %v240_v39, %v68_v36  ;;  %v166_v43 = vadd.f32 %v165_v40, %v64_v37  ;;  %v242_v44 = vpop.f32.mrb[1].mxu1 }
  0xf6   :  { %v243_v57 = vadd.f32 %v242_v44, %v72_v48 }
  0xf7   :  { %v324_v45 = vmul.f32 -1.442695, %v241_v42  ;;  %v322_v46 = vmul.f32 -1.442695, %v166_v43  ;;  %v169_v47 = vpop.f32.mrb[2].mxu0 }
  0xf8   :  { %v246_v49 = vpop.f32.mrb[2].mxu1  ;;  %v171_v50 = vpop.f32.mrb[3].mxu0  ;;  %v326_v59 = vmul.f32 -1.442695, %v243_v57  ;;  %v170_v3 = vadd.f32 %v169_v47, %v60_v58 }
  0xf9   :  { %348 = vpow2.f32 %v324_v45  ;;  %v247_v52 = vadd.f32 %v246_v49, %v68_v36  ;;  %v172_v53 = vadd.f32 %v171_v50, %v64_v37  ;;  %v248_v54 = vpop.f32.mrb[3].mxu1 }
  0xfa   :  { %350 = vpow2.f32 %v322_v46  ;;  %v249_v60 = vadd.f32 %v248_v54, %v72_v48 }
  0xfb   :  { %v325_v55 = vmul.f32 -1.442695, %v247_v52  ;;  %v323_v56 = vmul.f32 -1.442695, %v172_v53 }
  0xfc   :  { %v327_v1 = vmul.f32 -1.442695, %v249_v60 }
  0xfd   :  { %352 = vpow2.f32 %v325_v55 }
  0xfe   :  { %354 = vpow2.f32 %v323_v56 }
  0xff   :  { %356 = vpow2.f32 %v326_v59 }
 0x100   :  { %358 = vtanh.f32 %v164_v61 }
 0x103   :  { %v349_v62 = vpop.eup %348 }
 0x104   :  { %v351_v63 = vpop.eup %350  ;;  %v275_v0 = vadd.f32 1.0, %v349_v62 }
 0x105   :  { %v261_v2 = vadd.f32 1.0, %v351_v63 }
 0x106   :  { %360 = vrcp.f32 %v275_v0 }
 0x107   :  { %v353_v4 = vpop.eup %352  ;;  %362 = vrcp.f32 %v261_v2 }
 0x108   :  { %v355_v5 = vpop.eup %354  ;;  %v276_v6 = vadd.f32 1.0, %v353_v4  ;;  %364 = vpow2.f32 %v327_v1 }
 0x109   :  { %366 = vtanh.f32 %v170_v3  ;;  %v262_v7 = vadd.f32 1.0, %v355_v5  ;;  %v357_v8 = vpop.eup %356 }
 0x10a   :  { %368 = vrcp.f32 %v276_v6  ;;  %v359_v10 = vpop.eup %358  ;;  %v293_v14 = vadd.f32 1.0, %v357_v8 }
 0x10b   :  { %370 = vrcp.f32 %v262_v7 }
 0x10c   :  { %372 = vrcp.f32 %v293_v14 }
 0x110   :  { %v361_v11 = vpop.eup %360 }
 0x111   :  { %v363_v12 = vpop.eup %362  ;;  %v281_v13 = vmul.f32 %v361_v11, %v251_v9 }
 0x112   :  { %v365_v15 = vpop.eup %364  ;;  %v267_v16 = vmul.f32 %v363_v12, %v359_v10 }
 0x113   :  { %v367_v18 = vpop.eup %366  ;;  %v294_v23 = vadd.f32 1.0, %v365_v15 }
 0x114   :  { %v369_v19 = vpop.eup %368  ;;  %v283_v20 = vadd.f32 %v281_v13, %v267_v16 }
 0x115   :  { %v371_v21 = vpop.eup %370  ;;  %v282_v22 = vmul.f32 %v369_v19, %v252_v17 }
 0x116   :  { %374 = vtanh.f32 %v283_v20  ;;  %301 = vst [vmem:[%s482_s5] sm:$0xff] %v283_v20  ;;  %v268_v24 = vmul.f32 %v371_v21, %v367_v18  ;;  %v373_v26 = vpop.eup %372 }
 0x117   :  { %376 = vrcp.f32 %v294_v23 }
 0x118   :  { %v284_v25 = vadd.f32 %v282_v22, %v268_v24 }
 0x11a   :  { %378 = vtanh.f32 %v284_v25  ;;  %302 = vst [vmem:[%s482_s5 + $0x8] sm:$0xff] %v284_v25 }
 0x120   :  { %v375_v27 = vpop.eup %374 }
 0x121   :  { %v299_v28 = vmul.f32 %v375_v27, %v373_v26  ;;  %v377_v29 = vpop.eup %376 }
 0x123   :  { %303 = vst [vmem:[%s481_s4] sm:$0xff] %v299_v28 }
 0x124   :  { %v379_v30 = vpop.eup %378 }
 0x125   :  { %v300_v31 = vmul.f32 %v379_v30, %v377_v29 }
 0x127   :  { %304 = vst [vmem:[%s481_s4 + $0x8] sm:$0xff] %v300_v31 }
 0x128   :  { %313 = vsyncpa [#allocation3], 1 }

</bundles_post_ra>
